<compile_context>
chip_gen: v7x
topology: tpu7x:2x2x1
jax: 0.10.0
libtpu: 0.0.40
codegen_flags: <defaults>
</compile_context>

<pallas_src>
import functools
import math

import jax
import jax.numpy as jnp
import numpy as np
from jax.experimental import pallas as pl
from jax.experimental.pallas import tpu as pltpu

# ---------------- configuration (small synthetic shapes) ----------------
B = 2
HORIZON_STEPS = 4                 # Ta
ACTION_DIM = 3                    # Da
ACT_TOTAL = HORIZON_STEPS * ACTION_DIM         # 12
TO, DO = 1, 8                     # state: (B, To, Do)
PROP_DIM = TO * DO                # cond_dim = 8
T_RGB, C_IMG, H_IMG, W_IMG = 1, 3, 16, 16
IMG_COND_STEPS = 1
NUM_IMG = 1
PATCH = 8
PATCH_REPR = 16
N_PH, N_PW = H_IMG // PATCH, W_IMG // PATCH
NUM_PATCH = N_PH * N_PW                         # 4
REPR_DIM = NUM_PATCH * PATCH_REPR               # backbone.repr_dim = 64
VIS_DIM = 32                                    # visual_feature_dim
COND_ENC_DIM = VIS_DIM + PROP_DIM               # 40
TIME_DIM = 16
MLP_DIMS = [32, 32]
INPUT_DIM = TIME_DIM + ACT_TOTAL + COND_ENC_DIM  # 68

DENOISING_STEPS = 8
LEARN_EXPLORE_NOISE_FROM = 0
INITIAL_NOISE_SCHEDULER = "vp"    # not 'const' -> learnable-noise branch reachable
MIN_STD = 0.05
MAX_STD = 0.2
LOGVAR_MIN = math.log(MIN_STD ** 2)
LOGVAR_MAX = math.log(MAX_STD ** 2)
NOISE_HIDDEN = 32
NOISE_IN_DIM = TIME_DIM + COND_ENC_DIM          # 56
LN_EPS = 1e-5

PATCH_FLAT = T_RGB * C_IMG * PATCH * PATCH      # 192
RGB_FLAT = NUM_PATCH * PATCH_FLAT               # 768
OUT_W = 128                                     # lane-dense output slab width
XS_W = 128                                      # activation / layer-1 LHS slab width

# lane offsets inside the xs slab / assembled layer-1 LHS
L_ACT = 0
L_TIME = ACT_TOTAL                  # 12
L_VIS = L_TIME + TIME_DIM           # 28
L_STATE = L_VIS + VIS_DIM           # 60
L_T = 127                           # flow-matching time scalar

# static packing invariants (per review correctness concerns)
assert 2 * ACT_TOTAL <= OUT_W
assert L_STATE + PROP_DIM <= L_T
assert INPUT_DIM <= XS_W
assert MLP_DIMS[0] + NOISE_HIDDEN <= 64

# ---------------- pallas plumbing ----------------
_VMEM = pl.BlockSpec(memory_space=pltpu.MemorySpace.VMEM)


def _softplus(x):
    return jnp.maximum(x, 0.0) + jnp.log1p(jnp.exp(-jnp.abs(x)))


def _mish(x):
    return x * jnp.tanh(_softplus(x))


# ---------------- the single fused kernel ----------------
def fused_forward_kernel(compute_noise,
                         patches_ref, xs_ref, cvec_ref,
                         wvis_ref, wsmall_ref, w1m_ref, wout_ref,
                         o_ref, lhs_ref, olhs_ref):
    f32 = jnp.float32
    bf16 = jnp.bfloat16
    H1 = MLP_DIMS[0]
    H2 = MLP_DIMS[1]

    # ---- packed constants / biases: single (8,128) f32 slab ----
    freq = cvec_ref[0:1, 0:TIME_DIM]
    phase = cvec_ref[0:1, TIME_DIM:2 * TIME_DIM]
    comp_b = cvec_ref[1:2, 0:VIS_DIM]
    ln_g = cvec_ref[2:3, 0:VIS_DIM]
    ln_b = cvec_ref[3:4, 0:VIS_DIM]
    tb1 = cvec_ref[4:5, 0:2 * TIME_DIM]
    tb2 = cvec_ref[5:6, 0:TIME_DIM]
    mb2 = cvec_ref[5:6, 32:32 + H2]
    b1m = cvec_ref[6:7, 0:H1 + NOISE_HIDDEN]
    out_b = cvec_ref[7:8, :]

    # ---- backbone patch-embed + compress Linear folded into ONE dense dot,
    #      then LayerNorm -> Dropout(eval no-op) -> ReLU ----
    vis_pre = jnp.dot(patches_ref[...], wvis_ref[...],
                      preferred_element_type=f32) + comp_b          # (BP, 32)
    mu = jnp.mean(vis_pre, axis=-1, keepdims=True)
    var = jnp.mean((vis_pre - mu) ** 2, axis=-1, keepdims=True)
    vis = jnp.maximum(
        (vis_pre - mu) * jax.lax.rsqrt(var + LN_EPS) * ln_g + ln_b, 0.0)

    # ---- sinusoidal time embedding (f32, phase trick) -> Linear -> Mish -> Linear ----
    t = xs_ref[:, L_T:L_T + 1]                                       # (BP, 1)
    sincos = jnp.sin(t * freq + phase)                               # (BP, 16)
    th = _mish(jnp.dot(sincos.astype(bf16), wsmall_ref[0:TIME_DIM, :],
                       preferred_element_type=f32) + tb1)            # (BP, 32)
    te = jnp.dot(th.astype(bf16), wsmall_ref[TIME_DIM:3 * TIME_DIM, :],
                 preferred_element_type=f32)[:, 0:TIME_DIM] + tb2    # (BP, 16)

    # ---- assemble [act | time_emb | vis | state] in scratch and run the MERGED
    #      first layer: lanes [0,H1) = mlp_mean L1, [H1,H1+NOISE_HIDDEN) = noise L1 ----
    lhs_ref[...] = xs_ref[...]          # act @ [0:12), state @ [60:68), t @ 127, rest 0
    lhs_ref[:, L_TIME:L_TIME + TIME_DIM] = te
    lhs_ref[:, L_VIS:L_VIS + VIS_DIM] = vis
    h1n = jnp.dot(lhs_ref[...].astype(bf16), w1m_ref[...],
                  preferred_element_type=f32) + b1m                   # (BP, 64)

    h1 = _mish(h1n[:, 0:H1])
    h2 = _mish(jnp.dot(h1.astype(bf16),
                       wsmall_ref[3 * TIME_DIM:3 * TIME_DIM + H1, :],
                       preferred_element_type=f32) + mb2)             # (BP, 32)

    if compute_noise:
        # ExploreNoiseNet hidden (shares the merged layer-1 result) + merged heads
        nh = jnp.tanh(h1n[:, H1:H1 + NOISE_HIDDEN])                   # (BP, 32)
        olhs_ref[:, 0:H2] = h2
        olhs_ref[:, H2:H2 + NOISE_HIDDEN] = nh
        raw = jnp.dot(olhs_ref[...].astype(bf16), wout_ref[...],
                      preferred_element_type=f32) + out_b             # (BP, 128)
        # process_noise applied to the whole slab (cheap), selected on noise lanes
        lv = jnp.tanh(raw)
        lv = LOGVAR_MIN + (LOGVAR_MAX - LOGVAR_MIN) * (lv + 1.0) * 0.5
        nstd = jnp.exp(0.5 * lv)
        lane = jax.lax.broadcasted_iota(jnp.int32, raw.shape, 1)
        is_noise = jnp.logical_and(lane >= ACT_TOTAL, lane < 2 * ACT_TOTAL)
        o_ref[...] = jnp.where(is_noise, nstd, raw)
    else:
        # scheduler-table branch: noise net skipped entirely (trace-time gate)
        o_ref[...] = jnp.dot(h2.astype(bf16), wout_ref[0:H2, :],
                             preferred_element_type=f32) + out_b


# ---------------- deterministic parameter init (+ packing / folding) ----------------
def _linear_params(key, din, dout):
    kw, kb = jax.random.split(key)
    w = jax.random.normal(kw, (din, dout), jnp.float32) / math.sqrt(din)
    b = 0.01 * jax.random.normal(kb, (1, dout), jnp.float32)
    return w, b


def set_logprob_noise_levels():
    """NoisyFlowMLP.set_logprob_noise_levels with the 'vp' scheduler."""
    steps = jnp.linspace(0.0, 1.0, DENOISING_STEPS)
    if INITIAL_NOISE_SCHEDULER == "vp":
        std = jnp.sqrt(0.2 * steps * (1.0 - steps))
    elif INITIAL_NOISE_SCHEDULER == "lin":
        std = 0.1 * steps
    else:  # 'const' / 'const_schedule_itr'
        std = jnp.ones_like(steps) * MIN_STD
    std = jnp.clip(std, MIN_STD, MAX_STD)
    return jnp.tile(std[None, :, None], (1, 1, ACT_TOTAL))  # (1, K, act_total)


def init_params(key):
    ks = jax.random.split(key, 9)
    f32, bf16 = jnp.float32, jnp.bfloat16
    raw = {}

    # TODO(synk): the VitEncoder backbone is not defined in the given module; it is
    # approximated by a deterministic linear patch embedding (ViT stem).
    raw["patch_w"], raw["patch_b"] = _linear_params(ks[0], PATCH_FLAT, PATCH_REPR)
    raw["comp_w"], raw["comp_b"] = _linear_params(ks[1], REPR_DIM, VIS_DIM)
    raw["ln_g"] = jnp.ones((1, VIS_DIM), f32)
    raw["ln_b"] = jnp.zeros((1, VIS_DIM), f32)
    raw["tw1"], raw["tb1"] = _linear_params(ks[2], TIME_DIM, 2 * TIME_DIM)
    raw["tw2"], raw["tb2"] = _linear_params(ks[3], 2 * TIME_DIM, TIME_DIM)
    raw["mw1"], raw["mb1"] = _linear_params(ks[4], INPUT_DIM, MLP_DIMS[0])
    raw["mw2"], raw["mb2"] = _linear_params(ks[5], MLP_DIMS[0], MLP_DIMS[1])
    raw["mw3"], raw["mb3"] = _linear_params(ks[6], MLP_DIMS[1], ACT_TOTAL)
    raw["nw1"], raw["nb1"] = _linear_params(ks[7], NOISE_IN_DIM, NOISE_HIDDEN)
    raw["nw2"], raw["nb2"] = _linear_params(ks[8], NOISE_HIDDEN, ACT_TOTAL)

    packed = {}

    # --- fold patch embedding into the compress Linear: fully dense (768, 32) ---
    w_vis = jnp.concatenate(
        [raw["patch_w"] @ raw["comp_w"][p * PATCH_REPR:(p + 1) * PATCH_REPR, :]
         for p in range(NUM_PATCH)], axis=0)
    comp_b_eff = raw["comp_b"] + sum(
        raw["patch_b"] @ raw["comp_w"][p * PATCH_REPR:(p + 1) * PATCH_REPR, :]
        for p in range(NUM_PATCH))
    packed["w_vis"] = w_vis.astype(bf16)

    # --- small weight slab (80, 32): rows [0,16)=tw1, [16,48)=tw2 (lane-padded), [48,80)=mw2 ---
    w_small = jnp.zeros((3 * TIME_DIM + MLP_DIMS[0], 32), f32)
    w_small = w_small.at[0:TIME_DIM, :].set(raw["tw1"])
    w_small = w_small.at[TIME_DIM:3 * TIME_DIM, 0:TIME_DIM].set(raw["tw2"])
    w_small = w_small.at[3 * TIME_DIM:, 0:MLP_DIMS[1]].set(raw["mw2"])
    packed["w_small"] = w_small.astype(bf16)

    # --- merged first layer (128, 64): lanes [0,32)=mlp_mean L1, [32,64)=noise L1 ---
    # mw1 rows are already [act(12) | time(16) | vis(32) | state(8)];
    # nw1 rows are [time | vis | state] and start at lane offset L_TIME.
    w1m = jnp.zeros((XS_W, MLP_DIMS[0] + NOISE_HIDDEN), f32)
    w1m = w1m.at[0:INPUT_DIM, 0:MLP_DIMS[0]].set(raw["mw1"])
    w1m = w1m.at[L_TIME:L_TIME + NOISE_IN_DIM, MLP_DIMS[0]:].set(raw["nw1"])
    packed["w1m"] = w1m.astype(bf16)

    # --- merged output heads (64, 128): rows [0,32)=vel head, [32,64)=logvar head ---
    w_out = jnp.zeros((MLP_DIMS[1] + NOISE_HIDDEN, OUT_W), f32)
    w_out = w_out.at[0:MLP_DIMS[1], 0:ACT_TOTAL].set(raw["mw3"])
    w_out = w_out.at[MLP_DIMS[1]:, ACT_TOTAL:2 * ACT_TOTAL].set(raw["nw2"])
    packed["w_out"] = w_out.astype(bf16)

    # --- one (8, 128) f32 constant/bias slab (single DMA) ---
    half = TIME_DIM // 2
    freqs = jnp.exp(
        jnp.arange(half, dtype=f32) * (-math.log(10000.0) / (half - 1)))
    freq_full = jnp.concatenate([freqs, freqs])
    phase_full = jnp.concatenate(
        [jnp.zeros((half,), f32), jnp.full((half,), 0.5 * math.pi, f32)])
    cvec = jnp.zeros((8, 128), f32)
    cvec = cvec.at[0, 0:TIME_DIM].set(freq_full)
    cvec = cvec.at[0, TIME_DIM:2 * TIME_DIM].set(phase_full)  # cos(x)=sin(x+pi/2)
    cvec = cvec.at[1, 0:VIS_DIM].set(comp_b_eff[0])
    cvec = cvec.at[2, 0:VIS_DIM].set(raw["ln_g"][0])
    cvec = cvec.at[3, 0:VIS_DIM].set(raw["ln_b"][0])
    cvec = cvec.at[4, 0:2 * TIME_DIM].set(raw["tb1"][0])
    cvec = cvec.at[5, 0:TIME_DIM].set(raw["tb2"][0])
    cvec = cvec.at[5, 32:32 + MLP_DIMS[1]].set(raw["mb2"][0])
    cvec = cvec.at[6, 0:MLP_DIMS[0]].set(raw["mb1"][0])
    cvec = cvec.at[6, MLP_DIMS[0]:MLP_DIMS[0] + NOISE_HIDDEN].set(raw["nb1"][0])
    cvec = cvec.at[7, 0:ACT_TOTAL].set(raw["mb3"][0])
    cvec = cvec.at[7, ACT_TOTAL:2 * ACT_TOTAL].set(raw["nb2"][0])
    packed["cvec"] = cvec

    packed["logprob_noise_levels"] = set_logprob_noise_levels()
    return raw, packed


# ---------------- forward ----------------
def _patchify(rgb, Bn):
    # (B, T, C, H, W) -> (B, NUM_PATCH * T*C*P*P): patches in (ph, pw) row-major
    # order, per-patch pixels in (t, c, i, j) row-major order (matches w_vis fold).
    r = rgb.reshape(Bn, T_RGB, C_IMG, N_PH, PATCH, N_PW, PATCH)
    r = jnp.transpose(r, (0, 3, 5, 1, 2, 4, 6))
    return r.reshape(Bn, RGB_FLAT)


def _fused_call(compute_noise, BP, *args):
    kernel = functools.partial(fused_forward_kernel, compute_noise)
    return pl.pallas_call(
        kernel,
        out_shape=jax.ShapeDtypeStruct((BP, OUT_W), jnp.float32),
        in_specs=[_VMEM] * len(args),
        out_specs=_VMEM,
        scratch_shapes=[
            pltpu.VMEM((BP, XS_W), jnp.float32),                       # layer-1 LHS
            pltpu.VMEM((BP, MLP_DIMS[1] + NOISE_HIDDEN), jnp.float32),  # output LHS
        ],
    )(*args)


@functools.partial(jax.jit, static_argnames=("step", "learn_exploration_noise"))
def noisy_vision_flow_mlp_forward(params, action, time, state, rgb, step,
                                  learn_exploration_noise=False):
    """
    action: (B, Ta, Da), time: (B,), state: (B, To, Do),
    rgb: (B, T_rgb, C, H, W), step: python int (static).
    returns vel (B, Ta, Da), noise_std (B, Ta*Da)
    """
    Bn, Ta, Da = action.shape
    BP = max(8, ((Bn + 7) // 8) * 8)    # fill the f32 sublane dim (M >= 8)

    compute_noise = not (INITIAL_NOISE_SCHEDULER == "const"
                         or step < LEARN_EXPLORE_NOISE_FROM)

    # rgb handling (num_img == 1): keep last img_cond_steps, patch rearrange
    rgb = rgb[:, -IMG_COND_STEPS:].astype(jnp.float32)
    patches = _patchify(rgb, Bn)
    patches_p = jnp.zeros((BP, RGB_FLAT), jnp.bfloat16).at[:Bn].set(
        patches.astype(jnp.bfloat16))

    # activation slab: act / state / t at static lane offsets, rest zero
    xs = jnp.zeros((BP, XS_W), jnp.float32)
    xs = xs.at[:Bn, L_ACT:L_ACT + ACT_TOTAL].set(action.reshape(Bn, -1))
    xs = xs.at[:Bn, L_STATE:L_STATE + PROP_DIM].set(state.reshape(Bn, -1))
    xs = xs.at[:Bn, L_T].set(time.astype(jnp.float32).reshape(Bn))

    out = _fused_call(
        compute_noise, BP,
        patches_p, xs, params["cvec"],
        params["w_vis"], params["w_small"], params["w1m"], params["w_out"])

    vel = out[:Bn, :ACT_TOTAL].reshape(Bn, Ta, Da)
    if compute_noise:
        noise_std = out[:Bn, ACT_TOTAL:2 * ACT_TOTAL]
    else:
        # scheduler-table branch; negative `step` indexes from the end,
        # matching PyTorch's logprob_noise_levels[:, step] semantics.
        noise_std = jnp.tile(params["logprob_noise_levels"][:, step], (Bn, 1))

    # learn_exploration_noise only toggles .detach() in PyTorch -> no-op here
    return vel, noise_std


# ---------------- pure-JAX f32 reference of the unfused module ----------------
def reference_forward(raw, action, time, state, rgb):
    Bn = action.shape[0]
    act = action.reshape(Bn, -1)
    st = state.reshape(Bn, -1)
    r = rgb[:, -IMG_COND_STEPS:].astype(jnp.float32)
    r = _patchify(r, Bn).reshape(Bn, NUM_PATCH, PATCH_FLAT)
    feat = jnp.einsum("bpk,kd->bpd", r, raw["patch_w"]) + raw["patch_b"]
    feat = feat.reshape(Bn, REPR_DIM)
    y = feat @ raw["comp_w"] + raw["comp_b"]
    mu = y.mean(-1, keepdims=True)
    var = ((y - mu) ** 2).mean(-1, keepdims=True)
    vis = jnp.maximum((y - mu) / jnp.sqrt(var + LN_EPS) * raw["ln_g"] + raw["ln_b"], 0.0)

    half = TIME_DIM // 2
    freqs = jnp.exp(jnp.arange(half, dtype=jnp.float32) * (-math.log(10000.0) / (half - 1)))
    ang = time.reshape(Bn, 1).astype(jnp.float32) * freqs[None, :]
    sincos = jnp.concatenate([jnp.sin(ang), jnp.cos(ang)], axis=-1)
    th = _mish(sincos @ raw["tw1"] + raw["tb1"])
    te = th @ raw["tw2"] + raw["tb2"]

    emb = jnp.concatenate([act, te, vis, st], axis=-1)
    h1 = _mish(emb @ raw["mw1"] + raw["mb1"])
    h2 = _mish(h1 @ raw["mw2"] + raw["mb2"])
    vel = h2 @ raw["mw3"] + raw["mb3"]

    nf = jnp.concatenate([te, vis, st], axis=-1)
    nh = jnp.tanh(nf @ raw["nw1"] + raw["nb1"])
    lv = jnp.tanh(nh @ raw["nw2"] + raw["nb2"])
    lv = LOGVAR_MIN + (LOGVAR_MAX - LOGVAR_MIN) * (lv + 1.0) * 0.5
    nstd = jnp.exp(0.5 * lv)
    return vel.reshape(Bn, HORIZON_STEPS, ACTION_DIM), nstd


# ---------------- main ----------------
if __name__ == "__main__":
    key = jax.random.PRNGKey(0)
    pkey, akey, tkey, skey, rkey = jax.random.split(key, 5)

    raw, packed = init_params(pkey)
    action = jax.random.normal(akey, (B, HORIZON_STEPS, ACTION_DIM), jnp.float32)
    flow_time = jax.random.uniform(tkey, (B,), jnp.float32)
    state = jax.random.normal(skey, (B, TO, DO), jnp.float32)
    rgb = jax.random.uniform(rkey, (B, T_RGB, C_IMG, H_IMG, W_IMG), jnp.float32)

    # learnable-noise branch (step >= learn_explore_noise_from)
    vel, noise_std = noisy_vision_flow_mlp_forward(
        packed, action, flow_time, state, rgb, step=3)
    jax.block_until_ready((vel, noise_std))
    assert vel.shape == (B, HORIZON_STEPS, ACTION_DIM)
    assert noise_std.shape == (B, ACT_TOTAL)
    assert bool(jnp.all(noise_std >= MIN_STD - 1e-5))
    assert bool(jnp.all(noise_std <= MAX_STD + 1e-5))

    # cross-check against the unfused f32 reference (bf16 weights -> loose tol)
    vel_ref, nstd_ref = reference_forward(raw, action, flow_time, state, rgb)
    np.testing.assert_allclose(np.asarray(vel), np.asarray(vel_ref),
                               rtol=5e-2, atol=5e-2)
    np.testing.assert_allclose(np.asarray(noise_std), np.asarray(nstd_ref),
                               rtol=5e-2, atol=5e-2)

    # scheduler-table branch (step < learn_explore_noise_from)
    vel2, noise_std2 = noisy_vision_flow_mlp_forward(
        packed, action, flow_time, state, rgb, step=-1)
    jax.block_until_ready((vel2, noise_std2))
    assert noise_std2.shape == (B, ACT_TOTAL)
    np.testing.assert_allclose(np.asarray(vel2), np.asarray(vel_ref),
                               rtol=5e-2, atol=5e-2)
    assert bool(jnp.all(noise_std2 >= MIN_STD - 1e-5))
    assert bool(jnp.all(noise_std2 <= MAX_STD + 1e-5))

    print("KERNEL_OK")
</pallas_src>

<mosaic_0001>
module attributes {stable_mosaic.version = 11 : i64} {
  func.func @fused_forward_kernel(%arg0: memref<8x768xbf16, #tpu.memory_space<vmem>>, %arg1: memref<8x128xf32, #tpu.memory_space<vmem>>, %arg2: memref<8x128xf32, #tpu.memory_space<vmem>>, %arg3: memref<768x32xbf16, #tpu.memory_space<vmem>>, %arg4: memref<80x32xbf16, #tpu.memory_space<vmem>>, %arg5: memref<128x64xbf16, #tpu.memory_space<vmem>>, %arg6: memref<64x128xbf16, #tpu.memory_space<vmem>>, %arg7: memref<8x128xf32, #tpu.memory_space<vmem>>, %arg8: memref<8x128xf32, #tpu.memory_space<vmem>>, %arg9: memref<8x64xf32, #tpu.memory_space<vmem>>) attributes {dimension_semantics = [], scalar_prefetch = 0 : i64, scratch_operands = 2 : i64, tpu.core_type = #tpu.core_type<tc>} {
    %c0 = arith.constant 0 : index
    %c0_0 = arith.constant 0 : index
    %0 = vector.load %arg2[%c0, %c0_0] : memref<8x128xf32, #tpu.memory_space<vmem>>, vector<1x16xf32>
    %c0_1 = arith.constant 0 : index
    %c16 = arith.constant 16 : index
    %1 = vector.load %arg2[%c0_1, %c16] : memref<8x128xf32, #tpu.memory_space<vmem>>, vector<1x16xf32>
    %c1 = arith.constant 1 : index
    %c0_2 = arith.constant 0 : index
    %2 = vector.load %arg2[%c1, %c0_2] : memref<8x128xf32, #tpu.memory_space<vmem>>, vector<1x32xf32>
    %c2 = arith.constant 2 : index
    %c0_3 = arith.constant 0 : index
    %3 = vector.load %arg2[%c2, %c0_3] : memref<8x128xf32, #tpu.memory_space<vmem>>, vector<1x32xf32>
    %c3 = arith.constant 3 : index
    %c0_4 = arith.constant 0 : index
    %4 = vector.load %arg2[%c3, %c0_4] : memref<8x128xf32, #tpu.memory_space<vmem>>, vector<1x32xf32>
    %c4 = arith.constant 4 : index
    %c0_5 = arith.constant 0 : index
    %5 = vector.load %arg2[%c4, %c0_5] : memref<8x128xf32, #tpu.memory_space<vmem>>, vector<1x32xf32>
    %c5 = arith.constant 5 : index
    %c0_6 = arith.constant 0 : index
    %6 = vector.load %arg2[%c5, %c0_6] : memref<8x128xf32, #tpu.memory_space<vmem>>, vector<1x16xf32>
    %c5_7 = arith.constant 5 : index
    %c32 = arith.constant 32 : index
    %7 = vector.load %arg2[%c5_7, %c32] : memref<8x128xf32, #tpu.memory_space<vmem>>, vector<1x32xf32>
    %c6 = arith.constant 6 : index
    %c0_8 = arith.constant 0 : index
    %8 = vector.load %arg2[%c6, %c0_8] : memref<8x128xf32, #tpu.memory_space<vmem>>, vector<1x64xf32>
    %c7 = arith.constant 7 : index
    %c0_9 = arith.constant 0 : index
    %9 = vector.load %arg2[%c7, %c0_9] : memref<8x128xf32, #tpu.memory_space<vmem>>, vector<1x128xf32>
    %c0_10 = arith.constant 0 : index
    %c0_11 = arith.constant 0 : index
    %10 = vector.load %arg0[%c0_10, %c0_11] : memref<8x768xbf16, #tpu.memory_space<vmem>>, vector<8x768xbf16>
    %c0_12 = arith.constant 0 : index
    %c0_13 = arith.constant 0 : index
    %11 = vector.load %arg3[%c0_12, %c0_13] : memref<768x32xbf16, #tpu.memory_space<vmem>>, vector<768x32xbf16>
    %cst = arith.constant dense<0.000000e+00> : vector<8x32xf32>
    %12 = tpu.matmul %10, %11, %cst {dimension_numbers = #tpu.dot_dimension_numbers<[1], [0], [0], [1], [0, 0, 1, 1], [], []>} : vector<8x768xbf16>, vector<768x32xbf16>, vector<8x32xf32> -> vector<8x32xf32>
    %13 = vector.broadcast %2 : vector<1x32xf32> to vector<8x32xf32>
    %14 = arith.addf %12, %13 : vector<8x32xf32>
    %cst_14 = arith.constant dense<0.000000e+00> : vector<8xf32>
    %15 = vector.multi_reduction <add>, %14, %cst_14 [1] : vector<8x32xf32> to vector<8xf32>
    %16 = vector.shape_cast %15 : vector<8xf32> to vector<8x1xf32>
    %cst_15 = arith.constant 3.200000e+01 : f32
    %17 = vector.broadcast %cst_15 : f32 to vector<8x1xf32>
    %18 = arith.divf %16, %17 : vector<8x1xf32>
    %19 = vector.broadcast %18 : vector<8x1xf32> to vector<8x32xf32>
    %20 = arith.subf %14, %19 : vector<8x32xf32>
    %21 = arith.mulf %20, %20 : vector<8x32xf32>
    %cst_16 = arith.constant dense<0.000000e+00> : vector<8xf32>
    %22 = vector.multi_reduction <add>, %21, %cst_16 [1] : vector<8x32xf32> to vector<8xf32>
    %23 = vector.shape_cast %22 : vector<8xf32> to vector<8x1xf32>
    %cst_17 = arith.constant 3.200000e+01 : f32
    %24 = vector.broadcast %cst_17 : f32 to vector<8x1xf32>
    %25 = arith.divf %23, %24 : vector<8x1xf32>
    %26 = vector.broadcast %18 : vector<8x1xf32> to vector<8x32xf32>
    %27 = arith.subf %14, %26 : vector<8x32xf32>
    %cst_18 = arith.constant 9.99999974E-6 : f32
    %28 = vector.broadcast %cst_18 : f32 to vector<8x1xf32>
    %29 = arith.addf %25, %28 : vector<8x1xf32>
    %30 = math.rsqrt %29 : vector<8x1xf32>
    %31 = vector.broadcast %30 : vector<8x1xf32> to vector<8x32xf32>
    %32 = arith.mulf %27, %31 : vector<8x32xf32>
    %33 = vector.broadcast %3 : vector<1x32xf32> to vector<8x32xf32>
    %34 = arith.mulf %32, %33 : vector<8x32xf32>
    %35 = vector.broadcast %4 : vector<1x32xf32> to vector<8x32xf32>
    %36 = arith.addf %34, %35 : vector<8x32xf32>
    %cst_19 = arith.constant 0.000000e+00 : f32
    %37 = vector.broadcast %cst_19 : f32 to vector<8x32xf32>
    %38 = arith.maximumf %36, %37 : vector<8x32xf32>
    %c0_20 = arith.constant 0 : index
    %c127 = arith.constant 127 : index
    %39 = vector.load %arg1[%c0_20, %c127] : memref<8x128xf32, #tpu.memory_space<vmem>>, vector<8x1xf32>
    %40 = vector.broadcast %39 : vector<8x1xf32> to vector<8x16xf32>
    %41 = vector.broadcast %0 : vector<1x16xf32> to vector<8x16xf32>
    %42 = arith.mulf %40, %41 : vector<8x16xf32>
    %43 = vector.broadcast %1 : vector<1x16xf32> to vector<8x16xf32>
    %44 = arith.addf %42, %43 : vector<8x16xf32>
    %45 = math.sin %44 : vector<8x16xf32>
    %46 = arith.truncf %45 : vector<8x16xf32> to vector<8x16xbf16>
    %c0_21 = arith.constant 0 : index
    %c0_22 = arith.constant 0 : index
    %47 = vector.load %arg4[%c0_21, %c0_22] : memref<80x32xbf16, #tpu.memory_space<vmem>>, vector<16x32xbf16>
    %cst_23 = arith.constant dense<0.000000e+00> : vector<8x32xf32>
    %48 = tpu.matmul %46, %47, %cst_23 {dimension_numbers = #tpu.dot_dimension_numbers<[1], [0], [0], [1], [0, 0, 1, 1], [], []>} : vector<8x16xbf16>, vector<16x32xbf16>, vector<8x32xf32> -> vector<8x32xf32>
    %49 = vector.broadcast %5 : vector<1x32xf32> to vector<8x32xf32>
    %50 = arith.addf %48, %49 : vector<8x32xf32>
    %cst_24 = arith.constant 0.000000e+00 : f32
    %51 = vector.broadcast %cst_24 : f32 to vector<8x32xf32>
    %52 = arith.maximumf %50, %51 : vector<8x32xf32>
    %53 = math.absf %50 : vector<8x32xf32>
    %cst_25 = arith.constant 0.000000e+00 : f32
    %54 = vector.broadcast %cst_25 : f32 to vector<8x32xf32>
    %55 = arith.subf %54, %53 : vector<8x32xf32>
    %56 = math.exp %55 : vector<8x32xf32>
    %57 = math.log1p %56 : vector<8x32xf32>
    %58 = arith.addf %52, %57 : vector<8x32xf32>
    %59 = math.tanh %58 : vector<8x32xf32>
    %60 = arith.mulf %50, %59 : vector<8x32xf32>
    %61 = arith.truncf %60 : vector<8x32xf32> to vector<8x32xbf16>
    %c16_26 = arith.constant 16 : index
    %c0_27 = arith.constant 0 : index
    %62 = vector.load %arg4[%c16_26, %c0_27] : memref<80x32xbf16, #tpu.memory_space<vmem>>, vector<32x32xbf16>
    %cst_28 = arith.constant dense<0.000000e+00> : vector<8x32xf32>
    %63 = tpu.matmul %61, %62, %cst_28 {dimension_numbers = #tpu.dot_dimension_numbers<[1], [0], [0], [1], [0, 0, 1, 1], [], []>} : vector<8x32xbf16>, vector<32x32xbf16>, vector<8x32xf32> -> vector<8x32xf32>
    %64 = vector.extract_strided_slice %63 {offsets = [0, 0], sizes = [8, 16], strides = [1, 1]} : vector<8x32xf32> to vector<8x16xf32>
    %65 = vector.broadcast %6 : vector<1x16xf32> to vector<8x16xf32>
    %66 = arith.addf %64, %65 : vector<8x16xf32>
    %c0_29 = arith.constant 0 : index
    %c0_30 = arith.constant 0 : index
    %67 = vector.load %arg1[%c0_29, %c0_30] : memref<8x128xf32, #tpu.memory_space<vmem>>, vector<8x128xf32>
    %c0_31 = arith.constant 0 : index
    %c0_32 = arith.constant 0 : index
    %68 = vector.load %arg8[%c0_31, %c0_32] : memref<8x128xf32, #tpu.memory_space<vmem>>, vector<8x128xf32>
    tpu.vector_store %arg8[%c0_31, %c0_32], %67 {strides = array<i32>} : memref<8x128xf32, #tpu.memory_space<vmem>>, vector<8x128xf32>,
    %c0_33 = arith.constant 0 : index
    %c12 = arith.constant 12 : index
    %69 = vector.load %arg8[%c0_33, %c12] : memref<8x128xf32, #tpu.memory_space<vmem>>, vector<8x16xf32>
    tpu.vector_store %arg8[%c0_33, %c12], %66 {strides = array<i32>} : memref<8x128xf32, #tpu.memory_space<vmem>>, vector<8x16xf32>,
    %c0_34 = arith.constant 0 : index
    %c28 = arith.constant 28 : index
    %70 = vector.load %arg8[%c0_34, %c28] : memref<8x128xf32, #tpu.memory_space<vmem>>, vector<8x32xf32>
    tpu.vector_store %arg8[%c0_34, %c28], %38 {strides = array<i32>} : memref<8x128xf32, #tpu.memory_space<vmem>>, vector<8x32xf32>,
    %c0_35 = arith.constant 0 : index
    %c0_36 = arith.constant 0 : index
    %71 = vector.load %arg8[%c0_35, %c0_36] : memref<8x128xf32, #tpu.memory_space<vmem>>, vector<8x128xf32>
    %72 = arith.truncf %71 : vector<8x128xf32> to vector<8x128xbf16>
    %c0_37 = arith.constant 0 : index
    %c0_38 = arith.constant 0 : index
    %73 = vector.load %arg5[%c0_37, %c0_38] : memref<128x64xbf16, #tpu.memory_space<vmem>>, vector<128x64xbf16>
    %cst_39 = arith.constant dense<0.000000e+00> : vector<8x64xf32>
    %74 = tpu.matmul %72, %73, %cst_39 {dimension_numbers = #tpu.dot_dimension_numbers<[1], [0], [0], [1], [0, 0, 1, 1], [], []>} : vector<8x128xbf16>, vector<128x64xbf16>, vector<8x64xf32> -> vector<8x64xf32>
    %75 = vector.broadcast %8 : vector<1x64xf32> to vector<8x64xf32>
    %76 = arith.addf %74, %75 : vector<8x64xf32>
    %77 = vector.extract_strided_slice %76 {offsets = [0, 0], sizes = [8, 32], strides = [1, 1]} : vector<8x64xf32> to vector<8x32xf32>
    %cst_40 = arith.constant 0.000000e+00 : f32
    %78 = vector.broadcast %cst_40 : f32 to vector<8x32xf32>
    %79 = arith.maximumf %77, %78 : vector<8x32xf32>
    %80 = math.absf %77 : vector<8x32xf32>
    %cst_41 = arith.constant 0.000000e+00 : f32
    %81 = vector.broadcast %cst_41 : f32 to vector<8x32xf32>
    %82 = arith.subf %81, %80 : vector<8x32xf32>
    %83 = math.exp %82 : vector<8x32xf32>
    %84 = math.log1p %83 : vector<8x32xf32>
    %85 = arith.addf %79, %84 : vector<8x32xf32>
    %86 = math.tanh %85 : vector<8x32xf32>
    %87 = arith.mulf %77, %86 : vector<8x32xf32>
    %88 = arith.truncf %87 : vector<8x32xf32> to vector<8x32xbf16>
    %c48 = arith.constant 48 : index
    %c0_42 = arith.constant 0 : index
    %89 = vector.load %arg4[%c48, %c0_42] : memref<80x32xbf16, #tpu.memory_space<vmem>>, vector<32x32xbf16>
    %cst_43 = arith.constant dense<0.000000e+00> : vector<8x32xf32>
    %90 = tpu.matmul %88, %89, %cst_43 {dimension_numbers = #tpu.dot_dimension_numbers<[1], [0], [0], [1], [0, 0, 1, 1], [], []>} : vector<8x32xbf16>, vector<32x32xbf16>, vector<8x32xf32> -> vector<8x32xf32>
    %91 = vector.broadcast %7 : vector<1x32xf32> to vector<8x32xf32>
    %92 = arith.addf %90, %91 : vector<8x32xf32>
    %cst_44 = arith.constant 0.000000e+00 : f32
    %93 = vector.broadcast %cst_44 : f32 to vector<8x32xf32>
    %94 = arith.maximumf %92, %93 : vector<8x32xf32>
    %95 = math.absf %92 : vector<8x32xf32>
    %cst_45 = arith.constant 0.000000e+00 : f32
    %96 = vector.broadcast %cst_45 : f32 to vector<8x32xf32>
    %97 = arith.subf %96, %95 : vector<8x32xf32>
    %98 = math.exp %97 : vector<8x32xf32>
    %99 = math.log1p %98 : vector<8x32xf32>
    %100 = arith.addf %94, %99 : vector<8x32xf32>
    %101 = math.tanh %100 : vector<8x32xf32>
    %102 = arith.mulf %92, %101 : vector<8x32xf32>
    %103 = vector.extract_strided_slice %76 {offsets = [0, 32], sizes = [8, 32], strides = [1, 1]} : vector<8x64xf32> to vector<8x32xf32>
    %104 = math.tanh %103 : vector<8x32xf32>
    %c0_46 = arith.constant 0 : index
    %c0_47 = arith.constant 0 : index
    %105 = vector.load %arg9[%c0_46, %c0_47] : memref<8x64xf32, #tpu.memory_space<vmem>>, vector<8x32xf32>
    tpu.vector_store %arg9[%c0_46, %c0_47], %102 {strides = array<i32>} : memref<8x64xf32, #tpu.memory_space<vmem>>, vector<8x32xf32>,
    %c0_48 = arith.constant 0 : index
    %c32_49 = arith.constant 32 : index
    %106 = vector.load %arg9[%c0_48, %c32_49] : memref<8x64xf32, #tpu.memory_space<vmem>>, vector<8x32xf32>
    tpu.vector_store %arg9[%c0_48, %c32_49], %104 {strides = array<i32>} : memref<8x64xf32, #tpu.memory_space<vmem>>, vector<8x32xf32>,
    %c0_50 = arith.constant 0 : index
    %c0_51 = arith.constant 0 : index
    %107 = vector.load %arg9[%c0_50, %c0_51] : memref<8x64xf32, #tpu.memory_space<vmem>>, vector<8x64xf32>
    %108 = arith.truncf %107 : vector<8x64xf32> to vector<8x64xbf16>
    %c0_52 = arith.constant 0 : index
    %c0_53 = arith.constant 0 : index
    %109 = vector.load %arg6[%c0_52, %c0_53] : memref<64x128xbf16, #tpu.memory_space<vmem>>, vector<64x128xbf16>
    %cst_54 = arith.constant dense<0.000000e+00> : vector<8x128xf32>
    %110 = tpu.matmul %108, %109, %cst_54 {dimension_numbers = #tpu.dot_dimension_numbers<[1], [0], [0], [1], [0, 0, 1, 1], [], []>} : vector<8x64xbf16>, vector<64x128xbf16>, vector<8x128xf32> -> vector<8x128xf32>
    %111 = vector.broadcast %9 : vector<1x128xf32> to vector<8x128xf32>
    %112 = arith.addf %110, %111 : vector<8x128xf32>
    %113 = math.tanh %112 : vector<8x128xf32>
    %cst_55 = arith.constant 1.000000e+00 : f32
    %114 = vector.broadcast %cst_55 : f32 to vector<8x128xf32>
    %115 = arith.addf %113, %114 : vector<8x128xf32>
    %cst_56 = arith.constant 2.77258873 : f32
    %116 = vector.broadcast %cst_56 : f32 to vector<8x128xf32>
    %117 = arith.mulf %116, %115 : vector<8x128xf32>
    %cst_57 = arith.constant 5.000000e-01 : f32
    %118 = vector.broadcast %cst_57 : f32 to vector<8x128xf32>
    %119 = arith.mulf %117, %118 : vector<8x128xf32>
    %cst_58 = arith.constant -5.99146461 : f32
    %120 = vector.broadcast %cst_58 : f32 to vector<8x128xf32>
    %121 = arith.addf %120, %119 : vector<8x128xf32>
    %cst_59 = arith.constant 5.000000e-01 : f32
    %122 = vector.broadcast %cst_59 : f32 to vector<8x128xf32>
    %123 = arith.mulf %122, %121 : vector<8x128xf32>
    %124 = math.exp %123 : vector<8x128xf32>
    %125 = tpu.iota {dimensions = array<i32: 1>} : vector<8x128xi32>
    %c12_i32 = arith.constant 12 : i32
    %126 = vector.broadcast %c12_i32 : i32 to vector<8x128xi32>
    %127 = arith.cmpi sge, %125, %126 : vector<8x128xi32>
    %c24_i32 = arith.constant 24 : i32
    %128 = vector.broadcast %c24_i32 : i32 to vector<8x128xi32>
    %129 = arith.cmpi slt, %125, %128 : vector<8x128xi32>
    %130 = arith.andi %127, %129 : vector<8x128xi1>
    %131 = arith.select %130, %124, %112 : vector<8x128xi1>, vector<8x128xf32>
    %c0_60 = arith.constant 0 : index
    %c0_61 = arith.constant 0 : index
    %132 = vector.load %arg7[%c0_60, %c0_61] : memref<8x128xf32, #tpu.memory_space<vmem>>, vector<8x128xf32>
    tpu.vector_store %arg7[%c0_60, %c0_61], %131 {strides = array<i32>} : memref<8x128xf32, #tpu.memory_space<vmem>>, vector<8x128xf32>,
    return
  }
}

</mosaic_0001>

<bundles_post_ra>
// kernel: noisy_vision_flow_mlp_forward.1
= control target key start
LH: loop header
LB: loop body
LE: loop exit
PB: predicated region body
PF: predicated region fallthrough
CT: control target
= control target key end

     0   :  { %v1526_v0 = vmov 127   ;;  %s1527_s18 = smov 112   ;;  %v1528_v60 = vmov 0.0   ;;  %vm1529_vm0 = vmmov 0   ;;  %vm726_vm14 = vcmask 130048   ;;  %s1537_s16 = smov 12   ;;  %s1870_s1 = inlined_call_operand.vmem [shape: f32[8,128], index: 1, kind: input, shape index: {}]   ;;  %s1871_s3 = inlined_call_operand.vmem [shape: bf16[768,32], index: 3, kind: input, shape index: {}]   ;;  %s1872_s2 = inlined_call_operand.vmem [shape: f32[8,128], index: 2, kind: input, shape index: {}]   ;;  %s1873_s0 = inlined_call_operand.vmem [shape: bf16[8,768], index: 0, kind: input, shape index: {}]   ;;  %s1874_s4 = inlined_call_operand.vmem [shape: bf16[80,32], index: 4, kind: input, shape index: {}]   ;;  %s1875_s5 = inlined_call_operand.vmem [shape: bf16[128,64], index: 5, kind: input, shape index: {}]   ;;  %s1876_s6 = inlined_call_operand.vmem [shape: bf16[64,128], index: 6, kind: input, shape index: {}]   ;;  %s1877_s7 = inlined_call_operand.vmem [shape: f32[8,128], index: 7, kind: output, shape index: {}]  }
   0x1   :  { %1424 = vset.pattern.permute.xlu0 %v1526_v0  ;;  %v593_v1 = vld [vmem:[%s1870_s1] sm:$0xff]  ;;  %v1427_v4 = vld [vmem:[%s1871_s3 + $0x48] sm:$0xff]   ;;  %v1429_v6 = vld [vmem:[%s1871_s3 + $0x50] sm:$0xff]   ;;  %vm567_vm15 = vcmask 261120   ;;  %s1538_s20 = smov 96  }
   0x2   :  { %596 = vperm.xlu0 %1424, %v593_v1   ;;  %852 = vst [vmem:[#allocation2] sm:$0xff] %v593_v1  ;;  %v1425_v2 = vld [vmem:[%s1871_s3 + $0x40] sm:$0xff]   ;;  %v1428_v5 = vld [vmem:[%s1871_s3 + $0x8] sm:$0xff]   ;;  %v1430_v7 = vld [vmem:[%s1871_s3 + $0x10] sm:$0xff]  }
   0x3   :  { %v1426_v3 = vld [vmem:[%s1871_s3] sm:$0xff]   ;;  %1265 = vmatprep.subr.bf16.mxu0 %v1425_v2  ;;  %v1431_v9 = vld [vmem:[%s1871_s3 + $0x58] sm:$0xff]   ;;  %v1435_v13 = vld [vmem:[%s1871_s3 + $0x68] sm:$0xff]  }
   0x4   :  { %1266 = vmatpush3.bf16.msra.mxu0 %v1426_v3  ;;  %v1603_v8 = vld [vmem:[%s1872_s2] ss:$0 sm:$0xff]  ;;  %v1432_v10 = vld [vmem:[%s1871_s3 + $0x18] sm:$0xff]   ;;  %v1436_v17 = vld [vmem:[%s1871_s3 + $0x28] sm:$0xff]  }
   0x5   :  { %1267 = vmatprep.subr.bf16.mxu0 %v1427_v4  ;;  %v1433_v11 = vld [vmem:[%s1871_s3 + $0x60] sm:$0xff]   ;;  %v1437_v19 = vld [vmem:[%s1871_s3 + $0x70] sm:$0xff]   ;;  %v1447_v20 = vld [vmem:[%s1871_s3 + $0xc8] sm:$0xff]  }
   0x6   :  { %605 = vrot.lane.b32.xlu0 %v1603_v8, %s1527_s18  ;;  %v1434_v12 = vld [vmem:[%s1871_s3 + $0x20] sm:$0xff]   ;;  %v1448_v21 = vld [vmem:[%s1871_s3 + $0x88] sm:$0xff]   ;;  %v1438_v22 = vld [vmem:[%s1871_s3 + $0x30] sm:$0xff]  }
   0x7   :  { %v1441_v14 = vld [vmem:[%s1871_s3 + $0xc0] sm:$0xff]   ;;  %v1439_v23 = vld [vmem:[%s1871_s3 + $0x78] sm:$0xff]   ;;  %v1451_v24 = vld [vmem:[%s1871_s3 + $0xd0] sm:$0xff]  }
   0x8   :  { %1268 = vmatpush3.bf16.msra.mxu0 %v1428_v5  ;;  %v1442_v15 = vld [vmem:[%s1871_s3 + $0x80] sm:$0xff]   ;;  %1287 = vmatprep.subr.bf16.mxu1 %v1441_v14  ;;  %v1452_v25 = vld [vmem:[%s1871_s3 + $0x90] sm:$0xff]   ;;  %v1440_v26 = vld [vmem:[%s1871_s3 + $0x38] sm:$0xff]   ;;  %v1531_v14 = vmov 2475754826  }
   0x9   :  { %1269 = vmatprep.subr.bf16.mxu0 %v1429_v6  ;;  %v35_v16 = vld [vmem:[%s1873_s0] sm:$0xff]  ;;  %1288 = vmatpush3.bf16.msra.mxu1 %v1442_v15  ;;  %v1455_v28 = vld [vmem:[%s1871_s3 + $0xd8] sm:$0xff]   ;;  %v1449_v32 = vld [vmem:[%s1871_s3 + $0x148] sm:$0xff]  }
   0xa   :  { %v1180_v18 = vcombine.high %v35_v16, %v35_v16  ;;  %1289 = vmatprep.subr.bf16.mxu1 %v1447_v20  ;;  %v1445_v27 = vld [vmem:[%s1871_s3 + $0x140] sm:$0xff]   ;;  %v1456_v29 = vld [vmem:[%s1871_s3 + $0x98] sm:$0xff]   ;;  %v1179_v30 = vcombine.low %v35_v16, %v35_v16  ;;  %v1450_v35 = vld [vmem:[%s1871_s3 + $0x108] sm:$0xff]   ;;  %v1533_v20 = vmov 2102212464  }
   0xb   :  { %v1446_v31 = vld [vmem:[%s1871_s3 + $0x100] sm:$0xff]   ;;  %v1453_v36 = vld [vmem:[%s1871_s3 + $0x150] sm:$0xff]   ;;  %v1463_v37 = vld [vmem:[%s1871_s3 + $0xe8] sm:$0xff]  }
   0xc   :  { %1270 = vmatpush3.bf16.msra.mxu0 %v1430_v7  ;;  %479 = vmatprep.mubr.bf16.mxu0 %v1180_v18  ;;  %v1459_v33 = vld [vmem:[%s1871_s3 + $0xe0] sm:$0xff]   ;;  %v1464_v38 = vld [vmem:[%s1871_s3 + $0xa8] sm:$0xff]   ;;  %v1454_v39 = vld [vmem:[%s1871_s3 + $0x110] sm:$0xff]  }
   0xd   :  { %1271 = vmatprep.subr.bf16.mxu0 %v1431_v9  ;;  %1290 = vmatpush3.bf16.msra.mxu1 %v1448_v21  ;;  %v1460_v34 = vld [vmem:[%s1871_s3 + $0xa0] sm:$0xff]   ;;  %v1457_v40 = vld [vmem:[%s1871_s3 + $0x158] sm:$0xff]   ;;  %v1467_v41 = vld [vmem:[%s1871_s3 + $0xf0] sm:$0xff]  }
   0xe   :  { %1291 = vmatprep.subr.bf16.mxu1 %v1451_v24  ;;  %v1468_v42 = vld [vmem:[%s1871_s3 + $0xb0] sm:$0xff]   ;;  %v1458_v43 = vld [vmem:[%s1871_s3 + $0x118] sm:$0xff]   ;;  %v1461_v44 = vld [vmem:[%s1871_s3 + $0x160] sm:$0xff]  }
   0xf   :  { %v1471_v45 = vld [vmem:[%s1871_s3 + $0xf8] sm:$0xff]   ;;  %v1462_v47 = vld [vmem:[%s1871_s3 + $0x120] sm:$0xff]   ;;  %v36_v48 = vld [vmem:[%s1873_s0 + $0x8] sm:$0xff] }
  0x10   :  { %1272 = vmatpush3.bf16.msra.mxu0 %v1432_v10  ;;  %v1472_v46 = vld [vmem:[%s1871_s3 + $0xb8] sm:$0xff]   ;;  %v1465_v49 = vld [vmem:[%s1871_s3 + $0x168] sm:$0xff]   ;;  %v1181_v50 = vcombine.low %v36_v48, %v36_v48  ;;  %v1182_v51 = vcombine.high %v36_v48, %v36_v48  ;;  %v37_v52 = vld [vmem:[%s1873_s0 + $0x10] sm:$0xff]  ;;  %s1536_s0 = smov 28  }
  0x11   :  { %1273 = vmatprep.subr.bf16.mxu0 %v1433_v11  ;;  %1292 = vmatpush3.bf16.msra.mxu1 %v1452_v25  ;;  %v1184_v53 = vcombine.high %v37_v52, %v37_v52  ;;  %v1466_v54 = vld [vmem:[%s1871_s3 + $0x128] sm:$0xff]   ;;  %v1469_v55 = vld [vmem:[%s1871_s3 + $0x170] sm:$0xff]   ;;  %v1473_v57 = vld [vmem:[%s1871_s3 + $0x178] sm:$0xff]   ;;  %v1183_v59 = vcombine.low %v37_v52, %v37_v52 }
  0x12   :  { %1293 = vmatprep.subr.bf16.mxu1 %v1455_v28  ;;  %519 = vmatprep.mubr.bf16.mxu1 %v1182_v51  ;;  %v1470_v56 = vld [vmem:[%s1871_s3 + $0x130] sm:$0xff]   ;;  %v1476_v58 = vld [vmem:[%s1871_s3 + $0x138] sm:$0xff]   ;;  %v1479_v61 = vld [vmem:[%s1874_s4] sm:$0xff]  }
  0x14   :  { %1274 = vmatpush3.bf16.msra.mxu0 %v1434_v12 }
  0x15   :  { %1275 = vmatprep.subr.bf16.mxu0 %v1435_v13  ;;  %1294 = vmatpush3.bf16.msra.mxu1 %v1456_v29  ;;  %v1530_v13 = vmov 683565275  }
  0x16   :  { %1295 = vmatprep.subr.bf16.mxu1 %v1459_v33 }
  0x18   :  { %1276 = vmatpush3.bf16.msra.mxu0 %v1436_v17  ;;  %v1532_v17 = vmov 2131351028  }
  0x19   :  { %1277 = vmatprep.subr.bf16.mxu0 %v1437_v19  ;;  %1296 = vmatpush3.bf16.msra.mxu1 %v1460_v34 }
  0x1a   :  { %1297 = vmatprep.subr.bf16.mxu1 %v1463_v37 }
  0x1c   :  { %1278 = vmatpush3.bf16.msra.mxu0 %v1438_v22 }
  0x1d   :  { %1279 = vmatprep.subr.bf16.mxu0 %v1439_v23  ;;  %1298 = vmatpush3.bf16.msra.mxu1 %v1464_v38  ;;  %v1534_v23 = vmov 920167782  }
  0x1e   :  { %1299 = vmatprep.subr.bf16.mxu1 %v1467_v41 }
  0x20   :  { %1280 = vmatpush3.bf16.msra.mxu0 %v1440_v26  ;;  %v1535_v26 = vmov 1326507024  }
  0x21   :  { %1309 = vmatprep.subr.bf16.mxu0 %v1445_v27  ;;  %1300 = vmatpush3.bf16.msra.mxu1 %v1468_v42 }
  0x22   :  { %1301 = vmatprep.subr.bf16.mxu1 %v1471_v45 }
  0x23   :  { %480 = vmatmul.mubr.bf16.vlgmr.msra.gmra.mrb[0].mxu0 %v1179_v30 }
  0x24   :  { %1310 = vmatpush3.bf16.msra.mxu0 %v1446_v31  ;;  %559 = vmatprep.mubr.bf16.mxu0 %v1184_v53 }
  0x25   :  { %1311 = vmatprep.subr.bf16.mxu0 %v1449_v32  ;;  %1302 = vmatpush3.bf16.msra.mxu1 %v1472_v46 }
  0x26   :  { %1353 = vmatprep.subr.bf16.mxu1 %v1528_v60 }
  0x28   :  { %1312 = vmatpush3.bf16.msra.mxu0 %v1450_v35  ;;  %520 = vmatmul.mubr.bf16.vlgmr.msra.gmra.mrb[0].mxu1 %v1181_v50 }
  0x29   :  { %1313 = vmatprep.subr.bf16.mxu0 %v1453_v36  ;;  %1355 = vmatprep.mubr.msk.bf16.mxu1 %vm1529_vm0, %v1528_v60 }
  0x2a   :  { %1354 = vmatpush3.bf16.msra.mxu1 %v1479_v61 }
  0x2b   :  { %1359 = vmatprep.subr.bf16.mxu1 %v1528_v60 }
  0x2c   :  { %1314 = vmatpush3.bf16.msra.mxu0 %v1454_v39 }
  0x2d   :  { %1315 = vmatprep.subr.bf16.mxu0 %v1457_v40 }
  0x30   :  { %1316 = vmatpush3.bf16.msra.mxu0 %v1458_v43 }
  0x31   :  { %1317 = vmatprep.subr.bf16.mxu0 %v1461_v44 }
  0x34   :  { %1318 = vmatpush3.bf16.msra.mxu0 %v1462_v47 }
  0x35   :  { %1319 = vmatprep.subr.bf16.mxu0 %v1465_v49 }
  0x38   :  { %1320 = vmatpush3.bf16.msra.mxu0 %v1466_v54 }
  0x39   :  { %1321 = vmatprep.subr.bf16.mxu0 %v1469_v55 }
  0x3c   :  { %1322 = vmatpush3.bf16.msra.mxu0 %v1470_v56 }
  0x3d   :  { %1323 = vmatprep.subr.bf16.mxu0 %v1473_v57 }
  0x40   :  { %1324 = vmatpush3.bf16.msra.mxu0 %v1476_v58 }
  0x41   :  { %1387 = vmatprep.subr.bf16.mxu0 %v1528_v60 }
  0x43   :  { %560 = vmatmul.mubr.bf16.vlgmr.msra.gmra.mrb[4].mxu0 %v1183_v59 }
  0x44   :  { %1391 = vmatprep.mubr.msk.bf16.mxu0 %vm1529_vm0, %v1528_v60 }
  0x81   :  { %v597_v62 = vpop.permute.xlu0 %596 }
  0x82   :  { %v603_v63 = vmul.f32 %v1603_v8, %v597_v62 }
  0x85   :  { %v606_v0 = vpop.permute.xlu0 %605 }
  0x86   :  { %v1752_v1 = vadd.f32 %v606_v0, %v603_v63 }
  0x88   :  { %v612_v2 = vand.u32 2139095040, %v1752_v1  ;;  %v609_v6 = vand.u32 2147483647, %v1752_v1  ;;  %vm611_vm8 = vcmp.lt.s32.totalorder %v1752_v1, 0  ;;  %vm701_vm13 = vweird.f32 %v1752_v1 }
  0x8a   :  { %v613_v3 = vshrl.u32 %v612_v2, 23  ;;  %v616_v10 = vand.u32 8388607, %v609_v6  ;;  %vm610_vm9 = vcmp.le.f32.partialorder %v609_v6, 0.7853982 }
  0x8c   :  { %v1236_v4 = vadd.s32 4294967169, %v613_v3  ;;  %v617_v28 = vor.u32 8388608, %v616_v10 }
  0x8e   :  { %v619_v5 = vadd.s32 1, %v1236_v4  ;;  %v657_v42 = vshll.u32 %v617_v28, 8 }
  0x90   :  { %vm620_vm1 = vcmp.gt.s32.totalorder %v619_v5, 0 }
  0x91   :  { %v621_v7 = vsel %vm620_vm1, %v619_v5, 0 }
  0x92   :  { %v623_v9 = vand.u32 31, %v621_v7  ;;  %v622_v12 = vshrl.u32 %v621_v7, 5 }
  0x94   :  { %v624_v11 = vsub.s32 32, %v623_v9  ;;  %v626_v8 = vshll.u32 %v1530_v13, %v623_v9  ;;  %v629_v15 = vshll.u32 %v1531_v14, %v623_v9  ;;  %v632_v19 = vshll.u32 %v1532_v17, %v623_v9 }
  0x95   :  { %v635_v22 = vshll.u32 %v1533_v20, %v623_v9  ;;  %v638_v25 = vshll.u32 %v1534_v23, %v623_v9  ;;  %vm641_vm2 = vcmp.lt.s32.totalorder %v622_v12, 1  ;;  %vm644_vm3 = vcmp.lt.s32.totalorder %v622_v12, 4 }
  0x96   :  { %v627_v16 = vshrl.u32 %v1531_v14, %v624_v11  ;;  %v630_v18 = vshrl.u32 %v1532_v17, %v624_v11  ;;  %v633_v21 = vshrl.u32 %v1533_v20, %v624_v11  ;;  %v636_v24 = vshrl.u32 %v1534_v23, %v624_v11 }
  0x97   :  { %v639_v27 = vshrl.u32 %v1535_v26, %v624_v11  ;;  %v625_v37 = vshrl.u32 %v1530_v13, %v624_v11  ;;  %vm643_vm4 = vcmp.lt.s32.totalorder %v622_v12, 3  ;;  %vm642_vm5 = vcmp.lt.s32.totalorder %v622_v12, 2 }
  0x98   :  { %v628_v29 = vor.u32 %v627_v16, %v626_v8  ;;  %v631_v30 = vor.u32 %v630_v18, %v629_v15  ;;  %v634_v31 = vor.u32 %v633_v21, %v632_v19  ;;  %v637_v32 = vor.u32 %v636_v24, %v635_v22 }
  0x99   :  { %v640_v33 = vor.u32 %v639_v27, %v638_v25 }
  0x9a   :  { %v646_v34 = vsel %vm644_vm3, %v634_v31, 2102212464  ;;  %v649_v35 = vsel %vm641_vm2, %v628_v29, %v631_v30  ;;  %v653_v36 = vsel %vm641_vm2, %v631_v30, %v634_v31  ;;  %v650_v38 = vsel %vm644_vm3, %v637_v32, 920167782 }
  0x9b   :  { %v654_v39 = vsel %vm644_vm3, %v640_v33, 1326507024  ;;  %v651_v40 = vsel %vm643_vm4, %v634_v31, %v650_v38  ;;  %v645_v43 = vsel %vm641_vm2, %v625_v37, %v628_v29  ;;  %v647_v44 = vsel %vm643_vm4, %v631_v30, %v646_v34  ;;  %v1178_v37 = vld [vmem:[%s1872_s2 + $0x1] ss:$0 sm:$0xff] }
  0x9c   :  { %v655_v41 = vsel %vm643_vm4, %v637_v32, %v654_v39  ;;  %v652_v45 = vsel %vm642_vm5, %v649_v35, %v651_v40  ;;  %v648_v51 = vsel %vm642_vm5, %v645_v43, %v647_v44  ;;  %vm857_vm2 = vcmask 228448  }
  0x9d   :  { %v656_v46 = vsel %vm642_vm5, %v653_v36, %v655_v41  ;;  %v1761_v49 = vmul.u32.u64.low %v657_v42, %v652_v45  ;;  %v1762_v50 = vmul.u32.u64.high %v657_v42, %v652_v45, %v1761_v49  ;;  %v664_v53 = vmul.u32 %v657_v42, %v648_v51  ;;  %v1480_v51 = vld [vmem:[%s1874_s4 + $0x8] sm:$0xff]  }
  0x9e   :  { %v1758_v47 = vmul.u32.u64.low %v657_v42, %v656_v46  ;;  %v1759_v48 = vmul.u32.u64.high %v657_v42, %v656_v46, %v1758_v47  ;;  %vm863_vm3 = vcmask 490720   ;;  %vm1075_vm5 = vcmask 523520  }
  0x9f   :  { %v667_v52 = vadd.s32 1, %v1762_v50 }
  0xa0   :  { %vm666_vm6 = vc.u32 %v1759_v48, %v1761_v49  ;;  %v665_v3 = vadd.s32 %v1761_v49, %v1759_v48 }
  0xa1   :  { %v668_v54 = vsel %vm666_vm6, %v667_v52, %v1762_v50  ;;  %v1481_v52 = vld [vmem:[%s1874_s4 + $0x10] sm:$0xff]   ;;  %vm1115_vm6 = vcmask 523264  }
  0xa2   :  { %v669_v55 = vadd.s32 %v668_v54, %v664_v53 }
  0xa4   :  { %v670_v56 = vadd.s32 536870912, %v669_v55 }
  0xa6   :  { %v671_v57 = vshrl.u32 %v670_v56, 30 }
  0xa8   :  { %v672_v58 = vshll.u32 %v671_v57, 30  ;;  %v695_v16 = vsub.s32 4, %v671_v57 }
  0xaa   :  { %v673_v59 = vsub.s32 %v669_v55, %v672_v58  ;;  %v696_v19 = vsel %vm611_vm8, %v695_v16, %v671_v57  ;;  %v1240_v55 = vld [vmem:[%s1872_s2 + $0x4] ss:$0 sm:$0xff] }
  0xab   :  { %v698_v21 = vsel %vm610_vm9, 0, %v696_v19 }
  0xac   :  { %v675_v61 = vsub.s32 0, %v673_v59  ;;  %v702_v22 = vadd.s32 3, %v698_v21 }
  0xae   :  { %v1237_v62 = vmin.u32 %v675_v61, %v673_v59  ;;  %v703_v23 = vand.u32 3, %v702_v22 }
  0xb0   :  { %v677_v63 = vclz %v1237_v62  ;;  %vm708_vm10 = vcmp.eq.s32.totalorder %v703_v23, 2  ;;  %vm705_vm11 = vcmp.eq.s32.totalorder %v703_v23, 0  ;;  %vm704_vm12 = vcmp.lt.s32.totalorder %v703_v23, 2  ;;  %v1482_v23 = vld [vmem:[%s1875_s5] sm:$0xff]  }
  0xb2   :  { %v1238_v0 = vadd.s32 4294967294, %v677_v63 }
  0xb4   :  { %vm1239_vm7 = vcmp.lt.s32.totalorder %v1238_v0, 0 }
  0xb5   :  { %v680_v2 = vsel %vm1239_vm7, 0, %v1238_v0 }
  0xb6   :  { %v681_v4 = vsub.s32 32, %v680_v2  ;;  %v685_v5 = vsub.s32 4294967266, %v680_v2  ;;  %v682_v7 = vshll.u32 %v673_v59, %v680_v2 }
  0xb8   :  { %v683_v9 = vshrl.u32 %v665_v3, %v681_v4  ;;  %v686_v10 = vadd.s32 127, %v685_v5 }
  0xba   :  { %v684_v11 = vor.u32 %v683_v9, %v682_v7  ;;  %v687_v12 = vshll.u32 %v686_v10, 23 }
  0xbc   :  { %v688_v13 = vor.u32 4788187, %v687_v12  ;;  %v691_v14 = vcvt.s32.f32 %v684_v11 }
  0xbe   :  { %v689_v8 = vand.u32 2147483647, %v688_v13 }
  0xc0   :  { %v692_v15 = vmul.f32 %v691_v14, %v689_v8 }
  0xc2   :  { %v693_v17 = vxor.u32 2147483648, %v692_v15 }
  0xc4   :  { %v694_v18 = vsel %vm611_vm8, %v693_v17, %v692_v15 }
  0xc5   :  { %v697_v20 = vsel %vm610_vm9, %v1752_v1, %v694_v18 }
  0xc6   :  { %1496 = vcosq.f32 %v697_v20 }
  0xc7   :  { %1498 = vsinq.f32 %v697_v20 }
  0xd0   :  { %v1497_v24 = vpop.eup %1496 }
  0xd1   :  { %v1499_v25 = vpop.eup %1498  ;;  %v709_v26 = vxor.u32 2147483648, %v1497_v24 }
  0xd2   :  { %v706_v27 = vxor.u32 2147483648, %v1499_v25 }
  0xd3   :  { %v710_v28 = vsel %vm708_vm10, %v709_v26, %v1499_v25  ;;  %v1233_v25 = vld [vmem:[%s1872_s2 + $0x2] ss:$0 sm:$0xff] }
  0xd4   :  { %v707_v29 = vsel %vm705_vm11, %v1497_v24, %v706_v27  ;;  %v1483_v24 = vld [vmem:[%s1875_s5 + $0x8] sm:$0xff]   ;;  %v1234_v27 = vld [vmem:[%s1872_s2 + $0x3] ss:$0 sm:$0xff] }
  0xd5   :  { %v711_v6 = vsel %vm704_vm12, %v707_v29, %v710_v28  ;;  %v1484_v28 = vld [vmem:[%s1875_s5 + $0x10] sm:$0xff]  }
  0xd6   :  { %v712_v30 = vsel %vm701_vm13, nan, %v711_v6 }
  0xd7   :  { %v713_v31 = vpack.c.bf16 %v712_v30, %v712_v30 }
  0xd9   :  { %1356 = vmatmul.mubr.msk.bf16.vlgmr.msra.gmra.mrb[4].mxu1 %vm726_vm14, %v713_v31  ;;  %v1485_v31 = vld [vmem:[%s1875_s5 + $0x18] sm:$0xff]  }
  0xda   :  { %1363 = vmatprep.mubr.msk.bf16.mxu1 %vm1529_vm0, %v1528_v60  ;;  %1360 = vmatpush3.bf16.msra.mxu1 %v1480_v51 }
  0xdb   :  { %1361 = vmatprep.subr.bf16.mxu1 %v1528_v60 }
  0xde   :  { %1362 = vmatpush3.bf16.msra.mxu1 %v1481_v52 }
  0xdf   :  { %1367 = vmatprep.subr.bf16.mxu1 %v1528_v60 }
  0xf6   :  { %v1281_v32 = vpop.f32.mrb[0].mxu0 }
  0xf7   :  { %v1282_v33 = vpop.f32.mrb[1].mxu0 }
  0xf8   :  { %v1283_v34 = vadd.f32 %v1282_v33, %v1281_v32  ;;  %v1284_v35 = vpop.f32.mrb[2].mxu0  ;;  %v1486_v33 = vld [vmem:[%s1875_s5 + $0x20] sm:$0xff]  }
  0xf9   :  { %v1285_v36 = vpop.f32.mrb[3].mxu0  ;;  %v1488_v35 = vld [vmem:[%s1875_s5 + $0x30] sm:$0xff]  }
  0xfa   :  { %v482_v38 = vadd.f32 %v1283_v34, %v1178_v37  ;;  %v1487_v34 = vld [vmem:[%s1875_s5 + $0x28] sm:$0xff]   ;;  %v1489_v36 = vld [vmem:[%s1875_s5 + $0x38] sm:$0xff]   ;;  %v1246_v37 = vld [vmem:[%s1872_s2 + $0x5] ss:$0 sm:$0xff] }
  0xfb   :  { %v1303_v39 = vpop.f32.mrb[0].mxu1 }
  0xfc   :  { %v1304_v1 = vpop.f32.mrb[1].mxu1 }
  0xfd   :  { %v1305_v40 = vadd.f32 %v1304_v1, %v1303_v39  ;;  %v1306_v41 = vpop.f32.mrb[2].mxu1 }
  0xfe   :  { %v1307_v42 = vpop.f32.mrb[3].mxu1 }
  0xff   :  { %v522_v43 = vadd.f32 %v1305_v40, %v482_v38 }
 0x116   :  { %v1325_v44 = vpop.f32.mrb[4].mxu0 }
 0x117   :  { %v1326_v45 = vpop.f32.mrb[5].mxu0 }
 0x118   :  { %v1327_v46 = vadd.f32 %v1326_v45, %v1325_v44  ;;  %v1328_v47 = vpop.f32.mrb[6].mxu0 }
 0x119   :  { %v1329_v48 = vpop.f32.mrb[7].mxu0  ;;  %v1491_v47 = vld [vmem:[%s1874_s4 + $0x20] sm:$0xff]  }
 0x11a   :  { %v562_v49 = vadd.f32 %v1327_v46, %v522_v43  ;;  %v1490_v46 = vld [vmem:[%s1874_s4 + $0x18] sm:$0xff]   ;;  %v1247_v48 = vld [vmem:[%s1872_s2 + $0x6] ss:$0 sm:$0xff] }
 0x11b   :  { %1388 = vmatpush3.bf16.msra.mxu0 %v1490_v46 }
 0x11c   :  { %v568_v50 = vsel %vm567_vm15, %v562_v49, 0.0  ;;  %1389 = vmatprep.subr.bf16.mxu0 %v1528_v60 }
 0x11d   :  { %569 = vadd.xlane.f32.xlu1 %v568_v50 }
 0x11f   :  { %1390 = vmatpush3.bf16.msra.mxu0 %v1491_v47 }
 0x120   :  { %1395 = vmatprep.subr.bf16.mxu0 %v1528_v60 }
 0x1aa   :  { %v570_v53 = vpop.xlane.xlu1 %569 }
 0x1ab   :  { %v572_v54 = vmul.f32 0.03125, %v570_v53 }
 0x1ac   :  { %v764_v57 = vpop.f32.mrb[4].mxu1 }
 0x1ad   :  { %v573_v56 = vsub.f32 %v562_v49, %v572_v54  ;;  %v765_v58 = vadd.f32 %v1240_v55, %v764_v57  ;;  %v1357_v59 = vpop.f32.mrb[5].mxu1 }
 0x1ae   :  { %v767_v62 = vpop.f32.mrb[6].mxu1 }
 0x1af   :  { %v574_v61 = vmul.f32 %v573_v56, %v573_v56  ;;  %v771_v63 = vand.u32 2147483647, %v765_v58  ;;  %v1358_v0 = vpop.f32.mrb[7].mxu1  ;;  %v770_v14 = vmax.f32 %v765_v58, 0.0 }
 0x1b1   :  { %v575_v2 = vsel %vm567_vm15, %v574_v61, 0.0  ;;  %v772_v3 = vsub.f32 0.0, %v771_v63 }
 0x1b2   :  { %576 = vadd.xlane.f32.xlu1 %v575_v2 }
 0x1b3   :  { %v773_v4 = vmul.f32 1.442695, %v772_v3 }
 0x1b5   :  { %1500 = vpow2.f32 %v773_v4 }
 0x1bf   :  { %v1501_v5 = vpop.eup %1500 }
 0x1c0   :  { %v775_v7 = vadd.f32 1.0, %v1501_v5  ;;  %v778_v9 = vmul.f32 -0.5, %v1501_v5  ;;  %v781_v11 = vand.u32 2147483647, %v1501_v5 }
 0x1c2   :  { %1502 = vlog2.f32 %v775_v7  ;;  %v779_v10 = vadd.f32 1.0, %v778_v9  ;;  %vm782_vm1 = vcmp.lt.f32.partialorder %v781_v11, 0.0004427343  ;;  %v1492_v11 = vld [vmem:[%s1876_s6] sm:$0xff]  }
 0x1c4   :  { %v780_v8 = vmul.f32 %v1501_v5, %v779_v10 }
 0x1cc   :  { %v1503_v12 = vpop.eup %1502 }
 0x1cd   :  { %v777_v13 = vmul.f32 0.6931472, %v1503_v12  ;;  %v1493_v12 = vld [vmem:[%s1876_s6 + $0x8] sm:$0xff]  }
 0x1cf   :  { %v783_v15 = vsel %vm782_vm1, %v780_v8, %v777_v13  ;;  %v1494_v13 = vld [vmem:[%s1876_s6 + $0x10] sm:$0xff]   ;;  %v1495_v8 = vld [vmem:[%s1876_s6 + $0x18] sm:$0xff]  }
 0x1d0   :  { %v784_v16 = vadd.f32 %v783_v15, %v770_v14 }
 0x1d2   :  { %1504 = vtanh.f32 %v784_v16 }
 0x1dc   :  { %v1505_v17 = vpop.eup %1504 }
 0x1dd   :  { %v786_v18 = vmul.f32 %v1505_v17, %v765_v58 }
 0x1df   :  { %v787_v19 = vpack.c.bf16 %v786_v18, %v786_v18 }
 0x1e1   :  { %1364 = vmatmul.mubr.msk.bf16.vlgmr.msra.gmra.mrb[8].mxu1 %vm567_vm15, %v787_v19 }
 0x1e2   :  { %1383 = vmatprep.mubr.msk.bf16.mxu1 %vm1529_vm0, %v1528_v60  ;;  %1368 = vmatpush3.bf16.msra.mxu1 %v1482_v23 }
 0x1e3   :  { %1369 = vmatprep.subr.bf16.mxu1 %v1528_v60 }
 0x1e6   :  { %1370 = vmatpush3.bf16.msra.mxu1 %v1483_v24 }
 0x1e7   :  { %1371 = vmatprep.subr.bf16.mxu1 %v1528_v60 }
 0x1ea   :  { %1372 = vmatpush3.bf16.msra.mxu1 %v1484_v28 }
 0x1eb   :  { %1373 = vmatprep.subr.bf16.mxu1 %v1528_v60 }
 0x1ee   :  { %1374 = vmatpush3.bf16.msra.mxu1 %v1485_v31 }
 0x1ef   :  { %1375 = vmatprep.subr.bf16.mxu1 %v1528_v60 }
 0x1f2   :  { %1376 = vmatpush3.bf16.msra.mxu1 %v1486_v33 }
 0x1f3   :  { %1377 = vmatprep.subr.bf16.mxu1 %v1528_v60 }
 0x1f6   :  { %1378 = vmatpush3.bf16.msra.mxu1 %v1487_v34 }
 0x1f7   :  { %1379 = vmatprep.subr.bf16.mxu1 %v1528_v60 }
 0x1fa   :  { %1380 = vmatpush3.bf16.msra.mxu1 %v1488_v35 }
 0x1fb   :  { %1381 = vmatprep.subr.bf16.mxu1 %v1528_v60 }
 0x1fe   :  { %1382 = vmatpush3.bf16.msra.mxu1 %v1489_v36 }
 0x23f   :  { %v577_v20 = vpop.xlane.xlu1 %576 }
 0x240   :  { %v578_v21 = vmul.f32 0.03125, %v577_v20 }
 0x242   :  { %v579_v22 = vadd.f32 1e-05, %v578_v21 }
 0x244   :  { %1506 = vrsqrt.f32 %v579_v22 }
 0x24e   :  { %v1507_v26 = vpop.eup %1506 }
 0x24f   :  { %v581_v29 = vmul.f32 %v1507_v26, %v573_v56 }
 0x251   :  { %v586_v6 = vmul.f32 %v1233_v25, %v581_v29 }
 0x253   :  { %v591_v30 = vadd.f32 %v1234_v27, %v586_v6 }
 0x255   :  { %v592_v32 = vmax.f32 %v591_v30, 0.0 }
 0x257   :  { %860 = vrot.lane.b32.xlu1 %v592_v32, %s1536_s0 }
 0x2b4   :  { %v841_v38 = vpop.f32.mrb[8].mxu1 }
 0x2b5   :  { %v851_v39 = vadd.f32 %v1246_v37, %v841_v38  ;;  %v1365_v1 = vpop.f32.mrb[9].mxu1 }
 0x2b6   :  { %v844_v40 = vpop.f32.mrb[10].mxu1 }
 0x2b7   :  { %854 = vrot.lane.b32.xlu0 %v851_v39, %s1537_s16  ;;  %v1366_v41 = vpop.f32.mrb[11].mxu1 }
 0x2bb   :  { %1010 = vrot.lane.b32.xlu0 %v1246_v37, %s1538_s20  ;;  %v1259_v37 = vld [vmem:[%s1872_s2 + $0x7] ss:$0 sm:$0xff] }
 0x2c9   :  { %v861_v43 = vpop.permute.xlu1 %860 }
 0x329   :  { %v855_v42 = vpop.permute.xlu0 %854 }
 0x32a   :  { %858 = vst.msk [vmem:[#allocation2] sm:$0xff] %vm857_vm2, %v855_v42 }
 0x32b   :  { %864 = vst.msk [vmem:[#allocation2] sm:$0xff] %vm863_vm3, %v861_v43 }
 0x32d   :  { %v1011_v14 = vpop.permute.xlu0 %1010 }
 0x332   :  { %v865_v44 = vld [vmem:[#allocation2] sm:$0xff] }
 0x333   :  { %v866_v45 = vpack.c.bf16 %v865_v44, %v865_v44 }
 0x335   :  { %1384 = vmatmul.mubr.bf16.vlgmr.msra.gmra.mrb[12].mxu1 %v866_v45 }
 0x408   :  { %v969_v49 = vpop.f32.mrb[12].mxu1 }
 0x409   :  { %v970_v50 = vadd.f32 %v1247_v48, %v969_v49  ;;  %v1385_v51 = vpop.f32.mrb[13].mxu1  ;;  %v1167_v48 = vlaneseq }
 0x40a   :  { %v972_v52 = vpop.f32.mrb[14].mxu1 }
 0x40b   :  { %v976_v53 = vand.u32 2147483647, %v970_v50  ;;  %v1386_v54 = vpop.f32.mrb[15].mxu1  ;;  %v975_v3 = vmax.f32 %v970_v50, 0.0 }
 0x40d   :  { %v977_v55 = vsub.f32 0.0, %v976_v53 }
 0x40f   :  { %v978_v56 = vmul.f32 1.442695, %v977_v55 }
 0x411   :  { %1508 = vpow2.f32 %v978_v56 }
 0x41b   :  { %v1509_v57 = vpop.eup %1508 }
 0x41c   :  { %v980_v58 = vadd.f32 1.0, %v1509_v57  ;;  %v983_v59 = vmul.f32 -0.5, %v1509_v57  ;;  %v986_v62 = vand.u32 2147483647, %v1509_v57 }
 0x41e   :  { %1510 = vlog2.f32 %v980_v58  ;;  %v984_v61 = vadd.f32 1.0, %v983_v59  ;;  %vm987_vm4 = vcmp.lt.f32.partialorder %v986_v62, 0.0004427343 }
 0x420   :  { %v985_v2 = vmul.f32 %v1509_v57, %v984_v61 }
 0x428   :  { %v1511_v63 = vpop.eup %1510 }
 0x429   :  { %v982_v0 = vmul.f32 0.6931472, %v1511_v63 }
 0x42b   :  { %v988_v4 = vsel %vm987_vm4, %v985_v2, %v982_v0 }
 0x42c   :  { %v989_v5 = vadd.f32 %v988_v4, %v975_v3 }
 0x42e   :  { %1512 = vtanh.f32 %v989_v5 }
 0x438   :  { %v1513_v7 = vpop.eup %1512 }
 0x439   :  { %v991_v9 = vmul.f32 %v1513_v7, %v970_v50 }
 0x43b   :  { %v992_v10 = vpack.c.bf16 %v991_v9, %v991_v9 }
 0x43d   :  { %1392 = vmatmul.mubr.msk.bf16.vlgmr.msra.gmra.mrb[8].mxu0 %vm567_vm15, %v992_v10 }
 0x43e   :  { %1403 = vmatprep.mubr.msk.bf16.mxu0 %vm1529_vm0, %v1528_v60  ;;  %1396 = vmatpush3.bf16.msra.mxu0 %v1492_v11 }
 0x43f   :  { %1397 = vmatprep.subr.bf16.mxu0 %v1528_v60 }
 0x442   :  { %1398 = vmatpush3.bf16.msra.mxu0 %v1493_v12 }
 0x443   :  { %1399 = vmatprep.subr.bf16.mxu0 %v1528_v60 }
 0x446   :  { %1400 = vmatpush3.bf16.msra.mxu0 %v1494_v13 }
 0x447   :  { %1401 = vmatprep.subr.bf16.mxu0 %v1528_v60 }
 0x44a   :  { %1402 = vmatpush3.bf16.msra.mxu0 %v1495_v8 }
 0x510   :  { %v1050_v15 = vpop.f32.mrb[8].mxu0 }
 0x511   :  { %v1051_v16 = vadd.f32 %v1050_v15, %v1011_v14  ;;  %v1393_v17 = vpop.f32.mrb[9].mxu0 }
 0x512   :  { %v1053_v18 = vpop.f32.mrb[10].mxu0 }
 0x513   :  { %v1057_v19 = vand.u32 2147483647, %v1051_v16  ;;  %v1394_v20 = vpop.f32.mrb[11].mxu0  ;;  %v1056_v6 = vmax.f32 %v1051_v16, 0.0 }
 0x515   :  { %v1058_v21 = vsub.f32 0.0, %v1057_v19 }
 0x517   :  { %v1059_v22 = vmul.f32 1.442695, %v1058_v21 }
 0x519   :  { %1514 = vpow2.f32 %v1059_v22 }
 0x523   :  { %v1515_v23 = vpop.eup %1514 }
 0x524   :  { %v1061_v24 = vadd.f32 1.0, %v1515_v23  ;;  %v1064_v25 = vmul.f32 -0.5, %v1515_v23  ;;  %v1067_v27 = vand.u32 2147483647, %v1515_v23 }
 0x526   :  { %1516 = vlog2.f32 %v1061_v24  ;;  %v1065_v26 = vadd.f32 1.0, %v1064_v25  ;;  %vm1068_vm0 = vcmp.lt.f32.partialorder %v1067_v27, 0.0004427343 }
 0x528   :  { %v1066_v60 = vmul.f32 %v1515_v23, %v1065_v26 }
 0x530   :  { %v1517_v28 = vpop.eup %1516 }
 0x531   :  { %v1063_v29 = vmul.f32 0.6931472, %v1517_v28 }
 0x533   :  { %v1069_v30 = vsel %vm1068_vm0, %v1066_v60, %v1063_v29 }
 0x534   :  { %v1070_v31 = vadd.f32 %v1069_v30, %v1056_v6 }
 0x536   :  { %1518 = vtanh.f32 %v1070_v31 }
 0x537   :  { %1520 = vtanh.f32 %v970_v50  ;;  %v1168_v50 = vand.u32 127, %v1167_v48 }
 0x539   :  { %vm1169_vm7 = vcmp.ge.s32.totalorder %v1168_v50, 12  ;;  %vm1170_vm8 = vcmp.lt.s32.totalorder %v1168_v50, 24 }
 0x53a   :  { %vm1171_vm9 = vmand %vm1169_vm7, %vm1170_vm8 }
 0x540   :  { %v1519_v32 = vpop.eup %1518 }
 0x541   :  { %v1072_v33 = vmul.f32 %v1519_v32, %v1051_v16  ;;  %v1521_v34 = vpop.eup %1520 }
 0x543   :  { %1074 = vst.msk [vmem:[#allocation3] sm:$0xff] %vm567_vm15, %v1072_v33 }
 0x544   :  { %1076 = vst.msk [vmem:[#allocation3] sm:$0xff] %vm1075_vm5, %v1521_v34 }
 0x54b   :  { %v1077_v35 = vld [vmem:[#allocation3] sm:$0xff] }
 0x54c   :  { %v1078_v36 = vpack.c.bf16 %v1077_v35, %v1077_v35 }
 0x54e   :  { %1404 = vmatmul.mubr.msk.bf16.vlgmr.msra.gmra.mrb[12].mxu0 %vm1115_vm6, %v1078_v36 }
 0x621   :  { %v1153_v38 = vpop.f32.mrb[12].mxu0 }
 0x622   :  { %v1154_v39 = vadd.f32 %v1259_v37, %v1153_v38  ;;  %v1405_v1 = vpop.f32.mrb[13].mxu0 }
 0x623   :  { %v1156_v40 = vpop.f32.mrb[14].mxu0 }
 0x624   :  { %1522 = vtanh.f32 %v1154_v39  ;;  %v1406_v41 = vpop.f32.mrb[15].mxu0 }
 0x62e   :  { %v1523_v42 = vpop.eup %1522 }
 0x62f   :  { %v1160_v43 = vadd.f32 1.0, %v1523_v42 }
 0x631   :  { %v1161_v44 = vmul.f32 2.7725887, %v1160_v43 }
 0x633   :  { %v1162_v45 = vmul.f32 0.5, %v1161_v44 }
 0x635   :  { %v1163_v46 = vadd.f32 -5.9914646, %v1162_v45 }
 0x637   :  { %v1164_v47 = vmul.f32 0.5, %v1163_v46 }
 0x639   :  { %v1165_v49 = vmul.f32 1.442695, %v1164_v47 }
 0x63b   :  { %1524 = vpow2.f32 %v1165_v49 }
 0x645   :  { %v1525_v51 = vpop.eup %1524 }
 0x646   :  { %v1172_v52 = vsel %vm1171_vm9, %v1525_v51, %v1154_v39 }
 0x647   :  { %1173 = vst [vmem:[%s1877_s7] sm:$0xff] %v1172_v52 }

</bundles_post_ra>
